<compile_context>
chip_gen: v5e
topology: v5e:2x2
jax: 0.10.0
libtpu: 0.0.40
codegen_flags: <defaults>
</compile_context>

<pallas_src>
import math

import jax
import jax.numpy as jnp
import numpy as np
from jax.experimental import pallas as pl
from jax.experimental.pallas import tpu as pltpu

_LANES = 128
_SUBLANES = 8


# ----------------------------------------------------------------------------
# DCT filter construction (plain numpy glue — mirrors the PyTorch module)
# ----------------------------------------------------------------------------
def get_freq_indices(method):
    assert method in ['top1', 'top2', 'top4', 'top8', 'top16', 'top32',
                      'bot1', 'bot2', 'bot4', 'bot8', 'bot16', 'bot32',
                      'low1', 'low2', 'low4', 'low8', 'low16', 'low32']
    num_freq = int(method[3:])
    if 'top' in method:
        all_x = [0, 0, 6, 0, 0, 1, 1, 4, 5, 1, 3, 0, 0, 0, 3, 2,
                 4, 6, 3, 5, 5, 2, 6, 5, 5, 3, 3, 4, 2, 2, 6, 1]
        all_y = [0, 1, 0, 5, 2, 0, 2, 0, 0, 6, 0, 4, 6, 3, 5, 2,
                 6, 3, 3, 3, 5, 1, 1, 2, 4, 2, 1, 1, 3, 0, 5, 3]
    elif 'low' in method:
        all_x = [0, 0, 1, 1, 0, 2, 2, 1, 2, 0, 3, 4, 0, 1, 3, 0,
                 1, 2, 3, 4, 5, 0, 1, 2, 3, 4, 5, 6, 1, 2, 3, 4]
        all_y = [0, 1, 0, 1, 2, 0, 1, 2, 2, 3, 0, 0, 4, 3, 1, 5,
                 4, 3, 2, 1, 0, 6, 5, 4, 3, 2, 1, 0, 6, 5, 4, 3]
    else:  # 'bot'
        all_x = [6, 1, 3, 3, 2, 4, 1, 2, 4, 4, 5, 1, 4, 6, 2, 5,
                 6, 1, 6, 2, 2, 4, 3, 3, 5, 5, 6, 2, 5, 5, 3, 6]
        all_y = [6, 4, 4, 6, 6, 3, 1, 4, 4, 5, 6, 5, 2, 2, 5, 1,
                 4, 3, 5, 0, 3, 1, 1, 2, 4, 2, 1, 1, 5, 3, 3, 3]
    return all_x[:num_freq], all_y[:num_freq]


def build_filter(pos, freq, POS):
    result = math.cos(math.pi * freq * (pos + 0.5) / POS) / math.sqrt(POS)
    if freq == 0:
        return result
    return result * math.sqrt(2)


def get_dct_filter(tile_size_x, tile_size_y, mapper_x, mapper_y, in_channels):
    dct_filter = np.zeros((in_channels, tile_size_x, tile_size_y), dtype=np.float32)
    c_part = in_channels // len(mapper_x)
    for i, (u_x, v_y) in enumerate(zip(mapper_x, mapper_y)):
        for t_x in range(tile_size_x):
            for t_y in range(tile_size_y):
                dct_filter[i * c_part:(i + 1) * c_part, t_x, t_y] = (
                    build_filter(t_x, u_x, tile_size_x)
                    * build_filter(t_y, v_y, tile_size_y)
                )
    return dct_filter


# ----------------------------------------------------------------------------
# Generation-aware hardware queries (robust fallbacks)
# ----------------------------------------------------------------------------
def _vmem_capacity_bytes():
    try:
        cap = int(getattr(pltpu.get_tpu_info(), "vmem_capacity_bytes", 0))
        if cap > 0:
            return cap
    except Exception:
        pass
    return 64 * 1024 * 1024  # conservative: v7x per-TensorCore VMEM


def _num_tensorcores():
    """TensorCores a 'parallel' grid axis is sharded across, per JAX device."""
    try:
        kind = jax.devices()[0].device_kind.lower()
    except Exception:
        return 1
    if "lite" in kind or "v5e" in kind or "v6" in kind:
        return 1                      # v5e / v6e: single TensorCore per chip
    if "v2" in kind or "v3" in kind:
        return 1
    if "v4" in kind or "v5" in kind or "v7" in kind or "7x" in kind:
        return 2                      # megacore (v4/v5p) or dual-TC (v7x)
    return 1


def _default_target_block_bytes(vmem_cap):
    # v7x: 64 MiB VMEM / TC -> keep blocks modest.
    # v5e/v6e: 128 MiB physical VMEM -> bigger blocks amortize the ~0.35 us
    # per-grid-step overhead (single TC means extra steps buy nothing).
    if vmem_cap <= 64 * 1024 * 1024:
        return 8 * 1024 * 1024
    return 14 * 1024 * 1024


# ----------------------------------------------------------------------------
# Pallas kernel: fused (pool +) DCT weighted spatial reduction
# ----------------------------------------------------------------------------
def _dct_pool_kernel(x_ref, w_ref, o_ref):
    """x_ref: (Bn, C, HW) any float dtype, w_ref: (C, HW) f32, o_ref: (Bn, C) f32.

    HW sits on lanes.  The reduction is a strided VPU accumulation over
    128-lane chunks (per-chunk f32 cast, so bf16 blocks never materialize a
    full f32 copy) followed by a single cross-lane (XLU) reduce per row.
    """
    x = x_ref[...]
    w = w_ref[...]
    hw = x.shape[-1]
    n_full = hw // _LANES
    if hw > _LANES:
        acc = x[..., :_LANES].astype(jnp.float32) * w[None, :, :_LANES]
        for k in range(1, n_full):
            sl = slice(k * _LANES, (k + 1) * _LANES)
            acc = acc + x[..., sl].astype(jnp.float32) * w[None, :, sl]
        total = jnp.sum(acc, axis=-1)
        if hw % _LANES:
            tail = slice(n_full * _LANES, hw)
            total = total + jnp.sum(
                x[..., tail].astype(jnp.float32) * w[None, :, tail], axis=-1)
        o_ref[...] = total
    else:
        o_ref[...] = jnp.sum(x.astype(jnp.float32) * w[None, :, :], axis=-1)
    # TODO(synk): if profiling on v7x (bf16 inputs vs ~3.2 TB/s HBM) shows the
    # VPU/XLU reduce binding, contract HW on the idle MXU via a dot with ones.


def _pick_batch_block(n, row_vmem_bytes, target_block_bytes, num_cores):
    """Batch rows per grid step, sized against a VMEM budget and core count."""
    bn = max(1, min(n, target_block_bytes // max(row_vmem_bytes, 1)))
    if num_cores > 1 and n > 1:
        # Dual-TensorCore chips (v7x / megacore): need >= 2 steps per core so
        # each core overlaps DMA(i+1) with compute(i), and a core-count
        # multiple of steps so the two cores stay load-balanced.
        steps = pl.cdiv(n, bn)
        steps = max(steps, min(n, 2 * num_cores))
        steps = min(num_cores * pl.cdiv(steps, num_cores), n)
        bn = pl.cdiv(n, steps)
    if _SUBLANES <= bn < n:
        # 8-sublane alignment keeps the (bn, C) output stores unmasked.
        bn = (bn // _SUBLANES) * _SUBLANES
    return int(bn)


def multi_spectral_dct_pool(x, weight, *, target_block_bytes=None):
    """x: (N, C, H, W), weight: (C, H, W) f32 -> (N, C) f32 weighted spatial sum."""
    N, C, H, W = x.shape
    assert weight.shape == (C, H, W)
    HW = H * W

    # NCHW straight in (no transpose pass over x): the (bn, C, HW) block keeps
    # both trailing dims at full extent -> (8,128) rule satisfied and one
    # contiguous DMA per block.  HW<128 lane padding costs vregs, not HBM BW.
    x_flat = x.reshape(N, C, HW)
    w_flat = weight.reshape(C, HW).astype(jnp.float32)

    vmem_cap = _vmem_capacity_bytes()
    num_cores = _num_tensorcores()
    if target_block_bytes is None:
        target_block_bytes = _default_target_block_bytes(vmem_cap)

    # VMEM footprints use (8,128)-tiled padded sizes, not raw byte counts.
    hw_pad = pl.cdiv(HW, _LANES) * _LANES
    c_sub_pad = pl.cdiv(C, _SUBLANES) * _SUBLANES
    c_lane_pad = pl.cdiv(C, _LANES) * _LANES
    x_row_vmem = c_sub_pad * hw_pad * x_flat.dtype.itemsize
    w_vmem = c_sub_pad * hw_pad * 4

    bn = _pick_batch_block(N, x_row_vmem, target_block_bytes, num_cores)
    grid = (pl.cdiv(N, bn),)

    out_vmem = pl.cdiv(bn, _SUBLANES) * _SUBLANES * c_lane_pad * 4
    # Double-buffered x blocks + (resident but double-allocated) weight + out.
    vmem_need = 2 * bn * x_row_vmem + 2 * w_vmem + 2 * out_vmem
    # Always set the limit explicitly (the scoped default is only 16 MiB on
    # v5e); never below 32 MiB so we don't shrink the normal budget, and cap
    # at 75% of physical VMEM (~48 MiB on v7x's 64 MiB/TC) for Mosaic headroom.
    vmem_limit = int(min(max(vmem_need + vmem_need // 4 + (2 << 20), 32 << 20),
                         (vmem_cap * 3) // 4))

    return pl.pallas_call(
        _dct_pool_kernel,
        out_shape=jax.ShapeDtypeStruct((N, C), jnp.float32),
        grid_spec=pltpu.PrefetchScalarGridSpec(
            num_scalar_prefetch=0,
            grid=grid,
            in_specs=[
                pl.BlockSpec((bn, C, HW), lambda n: (n, 0, 0)),
                # Constant index_map -> DCT filter DMA'd once, resident in VMEM.
                # TODO(synk): pipeline_mode=pl.Buffered(1) would drop the unused
                # second weight buffer once that kwarg is stable everywhere.
                pl.BlockSpec((C, HW), lambda n: (0, 0)),
            ],
            out_specs=pl.BlockSpec((bn, C), lambda n: (n, 0)),
        ),
        compiler_params=pltpu.CompilerParams(
            dimension_semantics=("parallel",),
            vmem_limit_bytes=vmem_limit,
        ),
    )(x_flat, w_flat)


# ----------------------------------------------------------------------------
# Full MultiSpectralAttentionLayer forward (MLP + rescale are plain JAX glue)
# ----------------------------------------------------------------------------
def _expand_dct_weight(dct_weight, h, w):
    """Fuse adaptive_avg_pool2d into the DCT filter by expanding it to (C,H,W)
    and dividing by the pooling window area."""
    c, dh, dw = dct_weight.shape
    if (h, w) == (dh, dw):
        return dct_weight.astype(jnp.float32)
    # TODO(synk): only the evenly-divisible case of adaptive_avg_pool2d is
    # fused (covers all FcaNet configs); general variable windows would need a
    # separate pooling pass.
    assert h % dh == 0 and w % dw == 0
    kh, kw = h // dh, w // dw
    wf = jnp.repeat(jnp.repeat(dct_weight, kh, axis=1), kw, axis=2)
    return (wf / float(kh * kw)).astype(jnp.float32)


def _adaptive_avg_pool2d(x, out_h, out_w):
    # Reference-only helper (evenly divisible case).
    n, c, h, w = x.shape
    if h == out_h and w == out_w:
        return x
    assert h % out_h == 0 and w % out_w == 0
    return x.reshape(n, c, out_h, h // out_h, out_w, w // out_w).mean(axis=(3, 5))


def multi_spectral_attention_layer(x, dct_weight, fc1_w, fc1_b, fc2_w, fc2_b,
                                   dct_h, dct_w):
    n, c, h, w = x.shape
    # Pooling fused into the filter: the Pallas kernel reads full-res x once.
    w_full = _expand_dct_weight(dct_weight, h, w)                # (C, H, W) f32
    y = multi_spectral_dct_pool(x, w_full)                       # Pallas kernel
    y = jnp.maximum(y @ fc1_w + fc1_b, 0.0)                      # Linear + ReLU
    y = jax.nn.sigmoid(y @ fc2_w + fc2_b)                        # Linear + Sigmoid
    return x * y[:, :, None, None].astype(x.dtype)


def reference_forward(x, dct_weight, fc1_w, fc1_b, fc2_w, fc2_b, dct_h, dct_w):
    x_pooled = _adaptive_avg_pool2d(x, dct_h, dct_w)
    y = jnp.sum(x_pooled * dct_weight[None, :, :, :], axis=(2, 3))
    y = jnp.maximum(y @ fc1_w + fc1_b, 0.0)
    y = jax.nn.sigmoid(y @ fc2_w + fc2_b)
    return x * y[:, :, None, None]


# ----------------------------------------------------------------------------
# Main
# ----------------------------------------------------------------------------
if __name__ == "__main__":
    key = jax.random.PRNGKey(0)

    # (name, N, C, H, W, dct_h, dct_w, freq_sel_method, reduction)
    configs = [
        ("HW=256 toy (no pooling)",          2,   4, 16, 16, 16, 16, "top4",  2),
        ("FcaNet-like C=128 HW=49",          2, 128,  7,  7,  7,  7, "top16", 16),
        ("fused adaptive-pool 14x14 -> 7x7", 2, 128, 14, 14,  7,  7, "top16", 16),
    ]

    for name, n, c, h, w, dh, dw, method, red in configs:
        mapper_x, mapper_y = get_freq_indices(method)
        mapper_x = [mx * (dh // 7) for mx in mapper_x]
        mapper_y = [my * (dw // 7) for my in mapper_y]
        assert c % len(mapper_x) == 0

        dct_weight = jnp.asarray(get_dct_filter(dh, dw, mapper_x, mapper_y, c))

        key, k1, k2, k3, k4, k5 = jax.random.split(key, 6)
        x = jax.random.normal(k1, (n, c, h, w), dtype=jnp.float32)
        hidden = max(1, c // red)
        fc1_w = jax.random.normal(k2, (c, hidden), dtype=jnp.float32) * 0.1
        fc1_b = jax.random.normal(k3, (hidden,), dtype=jnp.float32) * 0.1
        fc2_w = jax.random.normal(k4, (hidden, c), dtype=jnp.float32) * 0.1
        fc2_b = jax.random.normal(k5, (c,), dtype=jnp.float32) * 0.1

        out = multi_spectral_attention_layer(
            x, dct_weight, fc1_w, fc1_b, fc2_w, fc2_b, dh, dw)
        out = jax.block_until_ready(out)

        ref = reference_forward(
            x, dct_weight, fc1_w, fc1_b, fc2_w, fc2_b, dh, dw)
        np.testing.assert_allclose(np.asarray(out), np.asarray(ref),
                                   rtol=1e-4, atol=1e-5, err_msg=name)

    print("KERNEL_OK")
</pallas_src>

<mosaic_0001>
module attributes {stable_mosaic.version = 11 : i64} {
  func.func @_dct_pool_kernel(%arg0: i32, %arg1: memref<2x4x256xf32, #tpu.memory_space<vmem>>, %arg2: memref<4x256xf32, #tpu.memory_space<vmem>>, %arg3: memref<2x4xf32, #tpu.memory_space<vmem>>) attributes {dimension_semantics = [#tpu.dimension_semantics<parallel>], iteration_bounds = array<i64: 1>, scalar_prefetch = 0 : i64, scratch_operands = 0 : i64, tpu.core_type = #tpu.core_type<tc>, window_params = [{transform_indices = @transform_0, window_bounds = array<i64: 2, 4, 256>}, {pipeline_mode = #tpu.pipeline_mode<synchronous>, transform_indices = @transform_1, window_bounds = array<i64: 4, 256>}, {transform_indices = @transform_2, window_bounds = array<i64: 2, 4>}]} {
    %c0 = arith.constant 0 : index
    %c0_0 = arith.constant 0 : index
    %c0_1 = arith.constant 0 : index
    %0 = vector.load %arg1[%c0, %c0_0, %c0_1] : memref<2x4x256xf32, #tpu.memory_space<vmem>>, vector<2x4x256xf32>
    %c0_2 = arith.constant 0 : index
    %c0_3 = arith.constant 0 : index
    %1 = vector.load %arg2[%c0_2, %c0_3] : memref<4x256xf32, #tpu.memory_space<vmem>>, vector<4x256xf32>
    %2 = vector.extract_strided_slice %0 {offsets = [0, 0, 0], sizes = [2, 4, 128], strides = [1, 1, 1]} : vector<2x4x256xf32> to vector<2x4x128xf32>
    %3 = vector.extract_strided_slice %1 {offsets = [0, 0], sizes = [4, 128], strides = [1, 1]} : vector<4x256xf32> to vector<4x128xf32>
    %4 = vector.shape_cast %3 : vector<4x128xf32> to vector<1x4x128xf32>
    %5 = vector.broadcast %4 : vector<1x4x128xf32> to vector<2x4x128xf32>
    %6 = arith.mulf %2, %5 : vector<2x4x128xf32>
    %7 = vector.extract_strided_slice %0 {offsets = [0, 0, 128], sizes = [2, 4, 128], strides = [1, 1, 1]} : vector<2x4x256xf32> to vector<2x4x128xf32>
    %8 = vector.extract_strided_slice %1 {offsets = [0, 128], sizes = [4, 128], strides = [1, 1]} : vector<4x256xf32> to vector<4x128xf32>
    %9 = vector.shape_cast %8 : vector<4x128xf32> to vector<1x4x128xf32>
    %10 = vector.broadcast %9 : vector<1x4x128xf32> to vector<2x4x128xf32>
    %11 = arith.mulf %7, %10 : vector<2x4x128xf32>
    %12 = arith.addf %6, %11 : vector<2x4x128xf32>
    %cst = arith.constant dense<0.000000e+00> : vector<2x4xf32>
    %13 = vector.multi_reduction <add>, %12, %cst [2] : vector<2x4x128xf32> to vector<2x4xf32>
    %c0_4 = arith.constant 0 : index
    %c0_5 = arith.constant 0 : index
    %14 = vector.load %arg3[%c0_4, %c0_5] : memref<2x4xf32, #tpu.memory_space<vmem>>, vector<2x4xf32>
    tpu.vector_store %arg3[%c0_4, %c0_5], %13 {strides = array<i32>} : memref<2x4xf32, #tpu.memory_space<vmem>>, vector<2x4xf32>,
    return
  }
  func.func @transform_0(%arg0: i32) -> (i32, i32, i32) {
    %c0_i32 = arith.constant 0 : i32
    %c0_i32_0 = arith.constant 0 : i32
    %c0_i32_1 = arith.constant 0 : i32
    return %arg0, %c0_i32, %c0_i32_0 : i32, i32, i32
  }
  func.func @transform_1(%arg0: i32) -> (i32, i32) {
    %c0_i32 = arith.constant 0 : i32
    %c0_i32_0 = arith.constant 0 : i32
    %c0_i32_1 = arith.constant 0 : i32
    return %c0_i32, %c0_i32_0 : i32, i32
  }
  func.func @transform_2(%arg0: i32) -> (i32, i32) {
    %c0_i32 = arith.constant 0 : i32
    %c0_i32_0 = arith.constant 0 : i32
    return %arg0, %c0_i32 : i32, i32
  }
}

</mosaic_0001>

<bundles_post_ra>
// kernel: tpu_custom_call.1
= control target key start
LH: loop header
LB: loop body
LE: loop exit
PB: predicated region body
PF: predicated region fallthrough
CT: control target
= control target key end

     0   :  { %7 = vsyncpa [#allocation3], 0  ;;  %s208_s0 = inlined_call_operand.hbm [shape: f32[2,4,256], index: 0, kind: input, shape index: {}]   ;;  %s209_s1 = inlined_call_operand.hbm [shape: f32[4,256], index: 1, kind: input, shape index: {}]   ;;  %s210_s2 = inlined_call_operand.hbm [shape: f32[2,4], index: 2, kind: output, shape index: {}]  }
   0x1   :  { %8 = vsyncpa [#allocation6], 0 }
   0x2   :  { %9 = vsyncpa [#allocation4], 0  ;;  %s14_s11 = sshll.u32 %s208_s0, 4  ;;  %s179_s12 = smov [#allocation2]   ;;  %s15_s11 = int_to_ptr.hbm [resolvable:$true] %s14_s11 }
   0x3   :  { %s16_s13 = sshll.u32 %s179_s12, 4  ;;  %s28_s16 = sshll.u32 %s209_s1, 4  ;;  %s17_s13 = int_to_ptr.vmem [resolvable:$true] %s16_s13  ;;  %s29_s16 = int_to_ptr.hbm [resolvable:$true] %s28_s16 }
   0x4   :  { %s180_s17 = smov 128   ;;  %s181_s18 = smov 8  }
   0x5   :  { %22 = dma.hbm_to_vmem [thread:$0]  %s15_s11, 256, %s17_s13, [#allocation3], %s180_s17, %s180_s17, %s181_s18  }
   0x6   :  { %s182_s19 = smov [#allocation5]  }
   0x7   :  { %s30_s20 = sshll.u32 %s182_s19, 4  ;;  %s31_s20 = int_to_ptr.vmem [resolvable:$true] %s30_s20 }
   0x8   :  { %33 = dma.hbm_to_vmem [thread:$0]  %s29_s16, 128, %s31_s20, [#allocation6]  }
   0x9   :  { %173 = dma.done.wait [#allocation3], 256  }
   0xa   :  { %174 = vsyncadd [#allocation3], 4294967040 }
   0xb   :  { %175 = dma.done.wait [#allocation6], 128  }
   0xc   :  { %176 = vsyncadd [#allocation6], 4294967168  ;;  %v42_v0 = vld [vmem:[#allocation2] sm:$0xff]  ;;  %v44_v1 = vld [vmem:[#allocation5] sm:$0xff]  ;;  %vm60_vm0 = vcmask 1043456   ;;  %v69_v15 = vlaneseq  ;;  %s183_s0 = smov [#allocation7]  }
   0xd   :  { %v43_v2 = vld [vmem:[#allocation2 + $0x8] sm:$0xff]  ;;  %v45_v3 = vmul.f32 %v44_v1, %v42_v0  ;;  %v48_v4 = vrot.slane %v44_v1, 4  ;;  %v52_v5 = vrot.slane %v42_v0, 4  ;;  %s83_s1 = sshll.u32 %s183_s0, 4  ;;  %s85_s23 = sshll.u32 %s210_s2, 4  ;;  %vm73_vm1 = vcmask 1041409   ;;  %s84_s1 = int_to_ptr.vmem [resolvable:$true] %s83_s1  ;;  %s86_s23 = int_to_ptr.hbm [resolvable:$true] %s85_s23 }
   0xe   :  { %v53_v6 = vrot.slane %v43_v2, 4  ;;  %v46_v9 = vmul.f32 %v44_v1, %v43_v2  ;;  %v70_v16 = vand.u32 127, %v69_v15  ;;  %vm76_vm2 = vcmask 25600  }
   0xf   :  { %v56_v7 = vmul.f32 %v52_v5, %v48_v4 }
  0x10   :  { %v57_v10 = vmul.f32 %v53_v6, %v48_v4 }
  0x11   :  { %v58_v8 = vadd.f32 %v56_v7, %v45_v3 }
  0x12   :  { %v59_v12 = vadd.f32 %v57_v10, %v46_v9 }
  0x13   :  { %v61_v11 = vsel %vm60_vm0, %v58_v8, 0.0 }
  0x14   :  { %62 = vadd.xlane.f32.xlu0 %v61_v11  ;;  %v64_v13 = vsel %vm60_vm0, %v59_v12, 0.0 }
  0x1c   :  { %65 = vadd.xlane.f32.xlu0 %v64_v13 }
  0x87   :  { %v63_v14 = vpop.xlane.xlu0 %62 }
  0x88   :  { %v71_v18 = vperm.slane %v63_v14, %v70_v16 }
  0x8f   :  { %v66_v17 = vpop.xlane.xlu0 %65 }
  0x90   :  { %v72_v19 = vperm.slane %v66_v17, %v70_v16 }
  0x92   :  { %v74_v20 = vsel %vm73_vm1, %v72_v19, %v71_v18 }
  0x93   :  { %77 = vst.msk [vmem:[#allocation7] sm:$0x3] %vm76_vm2, %v74_v20 }
  0x94   :  { %88 = dma.vmem_to_hbm [thread:$0]  %s84_s1, 32, %s86_s23, [#allocation4]  }
  0x95   :  { %177 = dma.done.wait [#allocation4], 32  }
  0x96   :  { %178 = vsyncadd [#allocation4], 4294967264 }
  0x97   :  { %93 = vsyncpa [#allocation3], 1 }
  0x98   :  { %94 = vsyncpa [#allocation6], 1 }
  0x99   :  { %95 = vsyncpa [#allocation4], 1 }

</bundles_post_ra>
